<compile_context>
chip_gen: v6e
topology: v6e:2x2x1
jax: 0.10.0
libtpu: 0.0.40
codegen_flags: <defaults>
</compile_context>

<pallas_src>
import functools

import jax
import jax.numpy as jnp
from jax.experimental import pallas as pl
from jax.experimental.pallas import tpu as pltpu


def _round_up(x, m):
    return (x + m - 1) // m * m


def _seq_classifier_kernel(x_ref, w_ref, b_ref, o_ref, acc_ref, *, inv_len):
    # x_ref: (TB, TL, Dp)   w_ref: (Dp, Cp)   b_ref: (1, Cp)
    # o_ref: (TB, Cp)       acc_ref: (TB, Dp) f32 scratch (persists across L tiles)
    l = pl.program_id(1)

    @pl.when(l == 0)
    def _():
        acc_ref[...] = jnp.zeros_like(acc_ref)

    # Per-tile partial sum over the sequence axis, accumulated in f32.
    acc_ref[...] += jnp.sum(x_ref[...].astype(jnp.float32), axis=1)

    @pl.when(l == pl.num_programs(1) - 1)
    def _():
        pooled = acc_ref[...] * inv_len                          # mean = sum * (1/L_true)
        out = jnp.dot(pooled, w_ref[...].astype(jnp.float32),
                      preferred_element_type=jnp.float32)        # (TB, Cp) on the MXU
        o_ref[...] = (out + b_ref[...].astype(jnp.float32)).astype(o_ref.dtype)


def sequence_classifier_avg(x, weight, bias, *, target_block_bytes=4 << 20):
    """mode='avg': mean over dim=1 then Linear.

    x: (B, L, D), weight: (C, D) [PyTorch nn.Linear layout], bias: (C,) -> (B, C)
    """
    B, L, D = x.shape
    C = weight.shape[0]

    # Lane-dense padding for feature / class dims (multiples of 128).
    Dp = _round_up(D, 128)
    Cp = _round_up(C, 128)

    # Batch tile: multiple of 8 sublanes, capped at 128 rows.
    TB = min(_round_up(B, 8), 128)
    Bp = _round_up(B, TB)

    # Sequence tile: keep each x block around `target_block_bytes` so the
    # double-buffered DMA stream is large enough to hit the HBM roofline yet
    # small enough for v7x's 64 MiB VMEM (2 x-bufs + W + bias + acc << 32 MiB).
    itemsize = jnp.dtype(x.dtype).itemsize
    bytes_per_seq_row = TB * Dp * itemsize
    TL = max(8, min(_round_up(L, 8),
                    _round_up(max(1, target_block_bytes // bytes_per_seq_row), 8)))
    Lp = _round_up(L, TL)

    # Zero padding is safe: padded seq rows add 0 to the sum (we scale by the
    # true L in the epilogue); padded feature/class columns are zero in W/bias
    # and are sliced off after the call.
    x_p = jnp.pad(x, ((0, Bp - B), (0, Lp - L), (0, Dp - D)))
    w_p = jnp.pad(weight.T, ((0, Dp - D), (0, Cp - C)))   # (Dp, Cp), transpose in wrapper
    b_p = jnp.pad(bias, (0, Cp - C)).reshape(1, Cp)

    grid = (Bp // TB, Lp // TL)   # (batch: parallel, seq: reduction/arbitrary)

    kernel = functools.partial(_seq_classifier_kernel, inv_len=1.0 / L)

    out_p = pl.pallas_call(
        kernel,
        out_shape=jax.ShapeDtypeStruct((Bp, Cp), x.dtype),
        grid=grid,
        in_specs=[
            pl.BlockSpec((TB, TL, Dp), lambda b, l: (b, l, 0)),
            pl.BlockSpec((Dp, Cp), lambda b, l: (0, 0)),
            pl.BlockSpec((1, Cp), lambda b, l: (0, 0)),
        ],
        out_specs=pl.BlockSpec((TB, Cp), lambda b, l: (b, 0)),
        scratch_shapes=[pltpu.VMEM((TB, Dp), jnp.float32)],
        compiler_params=pltpu.CompilerParams(
            dimension_semantics=("parallel", "arbitrary"),
            vmem_limit_bytes=32 * 1024 * 1024,
        ),
    )(x_p, w_p, b_p)

    return out_p[:B, :C]


if __name__ == "__main__":
    # Small shapes consistent with the module: batch=2, seq=8, in_features=32,
    # num_classes=10 (mode='avg', the module default).
    B, L, D, C = 2, 8, 32, 10

    key = jax.random.PRNGKey(0)
    kx, kw, kb = jax.random.split(key, 3)

    x = jax.random.normal(kx, (B, L, D), dtype=jnp.float32)

    # nn.Linear-shaped parameters: weight (num_classes, in_features), bias (num_classes,)
    bound = 1.0 / jnp.sqrt(jnp.float32(D))
    weight = jax.random.uniform(kw, (C, D), minval=-bound, maxval=bound,
                                dtype=jnp.float32)
    bias = jax.random.uniform(kb, (C,), minval=-bound, maxval=bound,
                              dtype=jnp.float32)

    out = sequence_classifier_avg(x, weight, bias)
    out = jax.block_until_ready(out)

    # Reference in plain JAX (same semantics as the PyTorch module).
    ref = jnp.mean(x, axis=1) @ weight.T + bias
    assert out.shape == (B, C)
    assert jnp.allclose(out, ref, atol=1e-5, rtol=1e-5)

    print("KERNEL_OK")
</pallas_src>

<mosaic_0001>
module attributes {stable_mosaic.version = 11 : i64} {
  func.func @_seq_classifier_kernel(%arg0: i32, %arg1: i32, %arg2: memref<8x8x128xf32, #tpu.memory_space<vmem>>, %arg3: memref<128x128xf32, #tpu.memory_space<vmem>>, %arg4: memref<1x128xf32, #tpu.memory_space<vmem>>, %arg5: memref<8x128xf32, #tpu.memory_space<vmem>>, %arg6: memref<8x128xf32, #tpu.memory_space<vmem>>) attributes {dimension_semantics = [#tpu.dimension_semantics<parallel>, #tpu.dimension_semantics<arbitrary>], iteration_bounds = array<i64: 1, 1>, scalar_prefetch = 0 : i64, scratch_operands = 1 : i64, tpu.core_type = #tpu.core_type<tc>, window_params = [{transform_indices = @transform_0, window_bounds = array<i64: 8, 8, 128>}, {pipeline_mode = #tpu.pipeline_mode<synchronous>, transform_indices = @transform_1, window_bounds = array<i64: 128, 128>}, {pipeline_mode = #tpu.pipeline_mode<synchronous>, transform_indices = @transform_2, window_bounds = array<i64: 1, 128>}, {transform_indices = @transform_3, window_bounds = array<i64: 8, 128>}]} {
    %c0_i32 = arith.constant 0 : i32
    %0 = arith.cmpi eq, %arg1, %c0_i32 : i32
    %1 = arith.extui %0 : i1 to i32
    %c0_i32_0 = arith.constant 0 : i32
    %2 = arith.cmpi ne, %1, %c0_i32_0 : i32
    scf.if %2 {
      %cst_9 = arith.constant 0.000000e+00 : f32
      %11 = vector.broadcast %cst_9 : f32 to vector<8x128xf32>
      %c0_10 = arith.constant 0 : index
      %c0_11 = arith.constant 0 : index
      %12 = vector.load %arg6[%c0_10, %c0_11] : memref<8x128xf32, #tpu.memory_space<vmem>>, vector<8x128xf32>
      tpu.vector_store %arg6[%c0_10, %c0_11], %11 {strides = array<i32>} : memref<8x128xf32, #tpu.memory_space<vmem>>, vector<8x128xf32>,
    } else {
    }
    %c0 = arith.constant 0 : index
    %c0_1 = arith.constant 0 : index
    %3 = vector.load %arg6[%c0, %c0_1] : memref<8x128xf32, #tpu.memory_space<vmem>>, vector<8x128xf32>
    %c0_2 = arith.constant 0 : index
    %c0_3 = arith.constant 0 : index
    %c0_4 = arith.constant 0 : index
    %4 = vector.load %arg2[%c0_2, %c0_3, %c0_4] : memref<8x8x128xf32, #tpu.memory_space<vmem>>, vector<8x8x128xf32>
    %cst = arith.constant dense<0.000000e+00> : vector<8x128xf32>
    %5 = vector.multi_reduction <add>, %4, %cst [1] : vector<8x8x128xf32> to vector<8x128xf32>
    %6 = arith.addf %3, %5 : vector<8x128xf32>
    %c0_5 = arith.constant 0 : index
    %c0_6 = arith.constant 0 : index
    %7 = vector.load %arg6[%c0_5, %c0_6] : memref<8x128xf32, #tpu.memory_space<vmem>>, vector<8x128xf32>
    tpu.vector_store %arg6[%c0_5, %c0_6], %6 {strides = array<i32>} : memref<8x128xf32, #tpu.memory_space<vmem>>, vector<8x128xf32>,
    %c0_i32_7 = arith.constant 0 : i32
    %8 = arith.cmpi eq, %arg1, %c0_i32_7 : i32
    %9 = arith.extui %8 : i1 to i32
    %c0_i32_8 = arith.constant 0 : i32
    %10 = arith.cmpi ne, %9, %c0_i32_8 : i32
    scf.if %10 {
      %c0_9 = arith.constant 0 : index
      %c0_10 = arith.constant 0 : index
      %11 = vector.load %arg6[%c0_9, %c0_10] : memref<8x128xf32, #tpu.memory_space<vmem>>, vector<8x128xf32>
      %cst_11 = arith.constant 1.250000e-01 : f32
      %12 = vector.broadcast %cst_11 : f32 to vector<8x128xf32>
      %13 = arith.mulf %11, %12 : vector<8x128xf32>
      %c0_12 = arith.constant 0 : index
      %c0_13 = arith.constant 0 : index
      %14 = vector.load %arg3[%c0_12, %c0_13] : memref<128x128xf32, #tpu.memory_space<vmem>>, vector<128x128xf32>
      %cst_14 = arith.constant dense<0.000000e+00> : vector<8x128xf32>
      %15 = tpu.matmul %13, %14, %cst_14 {dimension_numbers = #tpu.dot_dimension_numbers<[1], [0], [0], [1], [0, 0, 1, 1], [], []>} : vector<8x128xf32>, vector<128x128xf32>, vector<8x128xf32> -> vector<8x128xf32>
      %c0_15 = arith.constant 0 : index
      %c0_16 = arith.constant 0 : index
      %16 = vector.load %arg4[%c0_15, %c0_16] : memref<1x128xf32, #tpu.memory_space<vmem>>, vector<1x128xf32>
      %17 = vector.broadcast %16 : vector<1x128xf32> to vector<8x128xf32>
      %18 = arith.addf %15, %17 : vector<8x128xf32>
      %c0_17 = arith.constant 0 : index
      %c0_18 = arith.constant 0 : index
      %19 = vector.load %arg5[%c0_17, %c0_18] : memref<8x128xf32, #tpu.memory_space<vmem>>, vector<8x128xf32>
      tpu.vector_store %arg5[%c0_17, %c0_18], %18 {strides = array<i32>} : memref<8x128xf32, #tpu.memory_space<vmem>>, vector<8x128xf32>,
    } else {
    }
    return
  }
  func.func @transform_0(%arg0: i32, %arg1: i32) -> (i32, i32, i32) {
    %c0_i32 = arith.constant 0 : i32
    %c0_i32_0 = arith.constant 0 : i32
    return %arg0, %arg1, %c0_i32 : i32, i32, i32
  }
  func.func @transform_1(%arg0: i32, %arg1: i32) -> (i32, i32) {
    %c0_i32 = arith.constant 0 : i32
    %c0_i32_0 = arith.constant 0 : i32
    %c0_i32_1 = arith.constant 0 : i32
    return %c0_i32, %c0_i32_0 : i32, i32
  }
  func.func @transform_2(%arg0: i32, %arg1: i32) -> (i32, i32) {
    %c0_i32 = arith.constant 0 : i32
    %c0_i32_0 = arith.constant 0 : i32
    %c0_i32_1 = arith.constant 0 : i32
    return %c0_i32, %c0_i32_0 : i32, i32
  }
  func.func @transform_3(%arg0: i32, %arg1: i32) -> (i32, i32) {
    %c0_i32 = arith.constant 0 : i32
    %c0_i32_0 = arith.constant 0 : i32
    return %arg0, %c0_i32 : i32, i32
  }
}

</mosaic_0001>

<bundles_post_ra>
// kernel: tpu_custom_call.1
= control target key start
LH: loop header
LB: loop body
LE: loop exit
PB: predicated region body
PF: predicated region fallthrough
CT: control target
= control target key end

     0   :  { %8 = vsyncpa [#allocation4], 0  ;;  %s430_s0 = inlined_call_operand.hbm [shape: f32[8,8,128], index: 0, kind: input, shape index: {}]   ;;  %s431_s1 = inlined_call_operand.hbm [shape: f32[128,128], index: 1, kind: input, shape index: {}]   ;;  %s432_s2 = inlined_call_operand.vmem [shape: f32[1,128], index: 2, kind: input, shape index: {}]   ;;  %s433_s3 = inlined_call_operand.hbm [shape: f32[8,128], index: 3, kind: output, shape index: {}]  }
   0x1   :  { %9 = vsyncpa [#allocation7], 0 }
   0x2   :  { %10 = vsyncpa [#allocation5], 0  ;;  %s371_s12 = smov [#allocation3]  }
   0x3   :  { %s16_s13 = sshll.u32 %s371_s12, 4  ;;  %s17_s13 = int_to_ptr.vmem [resolvable:$true] %s16_s13 }
   0x4   :  { %s313_s14 = scalar_lea.vmem %s17_s13, 1024  ;;  %p318_p1 = scmp.lt.s32.totalorder %s17_s13, %s17_s13 }
   0x5   :  { %p314_p0 = scmp.ne.s32.totalorder %s17_s13, %s313_s14  ;;  %p319_p2 = scmp.lt.s32.totalorder %s313_s14, %s313_s14 }
   0x7   :  { %p320_p3 = por %p319_p2, %p318_p1 }
   0x9   :  { %p321_p4 = pnand %p320_p3, %p314_p0 }
   0xb   :  { %324 = shalt.err (!%p321_p4)
}
   0xc   :  { %s372_s15 = smov 128   ;;  %s373_s16 = smov 8  }
   0xd   :  { %22 = dma.hbm_to_vmem [thread:$0]  %s430_s0, 1024, %s17_s13, [#allocation4], %s372_s15, %s372_s15, %s373_s16  }
   0xe   :  { %s374_s19 = smov [#allocation6]  }
   0xf   :  { %s28_s20 = sshll.u32 %s374_s19, 4  ;;  %s29_s20 = int_to_ptr.vmem [resolvable:$true] %s28_s20 }
  0x10   :  { %s333_s21 = scalar_lea.vmem %s29_s20, 2048  ;;  %p338_p6 = scmp.lt.s32.totalorder %s29_s20, %s29_s20 }
  0x11   :  { %p334_p5 = scmp.ne.s32.totalorder %s29_s20, %s333_s21  ;;  %p339_p7 = scmp.lt.s32.totalorder %s333_s21, %s333_s21 }
  0x13   :  { %p340_p8 = por %p339_p7, %p338_p6 }
  0x15   :  { %p341_p9 = pnand %p340_p8, %p334_p5 }
  0x17   :  { %344 = shalt.err (!%p341_p9)
}
  0x18   :  { %34 = dma.hbm_to_vmem [thread:$0]  %s431_s1, 2048, %s29_s20, [#allocation7], %s372_s15, %s372_s15, %s373_s16  }
  0x19   :  { %365 = dma.done.wait [#allocation4], 1024  }
  0x1a   :  { %366 = vsyncadd [#allocation4], 4294966272 }
  0x1b   :  { %367 = dma.done.wait [#allocation7], 2048  }
  0x1c   :  { %368 = vsyncadd [#allocation7], 4294965248  ;;  %v375_v0 = vmov 0.0   ;;  %vm376_vm0 = vmmov 0   ;;  %v150_v1 = vld [vmem:[#allocation6 + $0x78] sm:$0xff]  ;;  %v149_v2 = vld [vmem:[#allocation6 + $0x70] sm:$0xff] }
  0x1d   :  { %263 = vmatprep.subr.mxu0 %v375_v0  ;;  %295 = vmatprep.mubr.msk.f32.mxu0 %vm376_vm0, %v375_v0  ;;  %v148_v3 = vld [vmem:[#allocation6 + $0x68] sm:$0xff]  ;;  %v147_v4 = vld [vmem:[#allocation6 + $0x60] sm:$0xff]  ;;  %v146_v5 = vld [vmem:[#allocation6 + $0x58] sm:$0xff]  ;;  %vm113_vm1 = vcmask 1041409   ;;  %vm115_vm2 = vcmask 1042434   ;;  %vm117_vm3 = vcmask 1043459  }
  0x1e   :  { %264 = vmatpush3.msra.mxu0 %v150_v1  ;;  %v49_v6 = vld [vmem:[#allocation3] sm:$0xff]  ;;  %v50_v7 = vld [vmem:[#allocation3 + $0x8] sm:$0xff]  ;;  %v51_v8 = vld [vmem:[#allocation3 + $0x10] sm:$0xff]  ;;  %vm119_vm4 = vcmask 1044484   ;;  %vm121_vm5 = vcmask 1045509   ;;  %vm123_vm6 = vcmask 1046534  }
  0x1f   :  { %265 = vmatprep.subr.mxu0 %v375_v0  ;;  %v52_v9 = vld [vmem:[#allocation3 + $0x18] sm:$0xff]  ;;  %v53_v10 = vld [vmem:[#allocation3 + $0x20] sm:$0xff]  ;;  %v57_v11 = vrot.slane %v49_v6, 4  ;;  %v63_v12 = vrot.slane %v50_v7, 4  ;;  %v54_v13 = vld [vmem:[#allocation3 + $0x28] sm:$0xff]  ;;  %v69_v16 = vrot.slane %v51_v8, 4 }
  0x20   :  { %266 = vmatpush3.msra.mxu0 %v149_v2  ;;  %v55_v14 = vld [vmem:[#allocation3 + $0x30] sm:$0xff]  ;;  %v56_v15 = vld [vmem:[#allocation3 + $0x38] sm:$0xff]  ;;  %v75_v17 = vrot.slane %v52_v9, 4  ;;  %v81_v18 = vrot.slane %v53_v10, 4  ;;  %v87_v22 = vrot.slane %v54_v13, 4  ;;  %v144_v28 = vld [vmem:[#allocation6 + $0x48] sm:$0xff] }
  0x21   :  { %267 = vmatprep.subr.mxu0 %v375_v0  ;;  %v145_v19 = vld [vmem:[#allocation6 + $0x50] sm:$0xff]  ;;  %v58_v20 = vadd.f32 %v57_v11, %v49_v6  ;;  %v64_v21 = vadd.f32 %v63_v12, %v50_v7  ;;  %v93_v23 = vrot.slane %v55_v14, 4  ;;  %v70_v24 = vadd.f32 %v69_v16, %v51_v8  ;;  %v143_v37 = vld [vmem:[#allocation6 + $0x40] sm:$0xff]  ;;  %v142_v46 = vld [vmem:[#allocation6 + $0x38] sm:$0xff]  ;;  %s377_s24 = smov [#allocation8]  }
  0x22   :  { %268 = vmatpush3.msra.mxu0 %v148_v3  ;;  %v76_v25 = vadd.f32 %v75_v17, %v52_v9  ;;  %v82_v26 = vadd.f32 %v81_v18, %v53_v10  ;;  %v99_v27 = vrot.slane %v56_v15, 4  ;;  %v88_v31 = vadd.f32 %v87_v22, %v54_v13  ;;  %v141_v55 = vld [vmem:[#allocation6 + $0x30] sm:$0xff]  ;;  %v140_v1 = vld [vmem:[#allocation6 + $0x28] sm:$0xff]  ;;  %v139_v6 = vld [vmem:[#allocation6 + $0x20] sm:$0xff]  ;;  %s235_s25 = sshll.u32 %s377_s24, 4  ;;  %s236_s25 = int_to_ptr.vmem [resolvable:$true] %s235_s25 }
  0x23   :  { %269 = vmatprep.subr.mxu0 %v375_v0  ;;  %v59_v29 = vrot.slane %v58_v20, 2  ;;  %v65_v30 = vrot.slane %v64_v21, 2  ;;  %v94_v32 = vadd.f32 %v93_v23, %v55_v14  ;;  %v71_v33 = vrot.slane %v70_v24, 2  ;;  %v138_v10 = vld [vmem:[#allocation6 + $0x18] sm:$0xff]  ;;  %v137_v13 = vld [vmem:[#allocation6 + $0x10] sm:$0xff]  ;;  %v135_v16 = vld [vmem:[#allocation6] sm:$0xff]  ;;  %p350_p11 = scmp.lt.s32.totalorder %s236_s25, %s236_s25 }
  0x24   :  { %270 = vmatpush3.msra.mxu0 %v147_v4  ;;  %v77_v34 = vrot.slane %v76_v25, 2  ;;  %v83_v35 = vrot.slane %v82_v26, 2  ;;  %v100_v36 = vadd.f32 %v99_v27, %v56_v15  ;;  %v89_v40 = vrot.slane %v88_v31, 2  ;;  %v136_v15 = vld [vmem:[#allocation6 + $0x8] sm:$0xff]  ;;  %v245_v18 = vld [vmem:[%s432_s2] ss:$0 sm:$0xff] }
  0x25   :  { %271 = vmatprep.subr.mxu0 %v375_v0  ;;  %v60_v38 = vadd.f32 %v59_v29, %v58_v20  ;;  %v66_v39 = vadd.f32 %v65_v30, %v64_v21  ;;  %v95_v41 = vrot.slane %v94_v32, 2  ;;  %v72_v42 = vadd.f32 %v71_v33, %v70_v24  ;;  %s345_s26 = scalar_lea.vmem %s236_s25, 128 }
  0x26   :  { %272 = vmatpush3.msra.mxu0 %v146_v5  ;;  %v78_v43 = vadd.f32 %v77_v34, %v76_v25  ;;  %v84_v44 = vadd.f32 %v83_v35, %v82_v26  ;;  %v101_v45 = vrot.slane %v100_v36, 2  ;;  %v90_v49 = vadd.f32 %v89_v40, %v88_v31  ;;  %p346_p10 = scmp.ne.s32.totalorder %s236_s25, %s345_s26  ;;  %p351_p12 = scmp.lt.s32.totalorder %s345_s26, %s345_s26 }
  0x27   :  { %273 = vmatprep.subr.mxu0 %v375_v0  ;;  %v61_v47 = vrot.slane %v60_v38, 1  ;;  %v67_v48 = vrot.slane %v66_v39, 1  ;;  %v96_v50 = vadd.f32 %v95_v41, %v94_v32  ;;  %v73_v51 = vrot.slane %v72_v42, 1 }
  0x28   :  { %274 = vmatpush3.msra.mxu0 %v145_v19  ;;  %v79_v52 = vrot.slane %v78_v43, 1  ;;  %v85_v53 = vrot.slane %v84_v44, 1  ;;  %v102_v54 = vadd.f32 %v101_v45, %v100_v36  ;;  %v91_v58 = vrot.slane %v90_v49, 1  ;;  %p352_p13 = por %p351_p12, %p350_p11 }
  0x29   :  { %275 = vmatprep.subr.mxu0 %v375_v0  ;;  %v62_v56 = vadd.f32 %v61_v47, %v60_v38  ;;  %v68_v57 = vadd.f32 %v67_v48, %v66_v39  ;;  %v97_v59 = vrot.slane %v96_v50, 1  ;;  %v74_v60 = vadd.f32 %v73_v51, %v72_v42 }
  0x2a   :  { %276 = vmatpush3.msra.mxu0 %v144_v28  ;;  %v80_v61 = vadd.f32 %v79_v52, %v78_v43  ;;  %v86_v62 = vadd.f32 %v85_v53, %v84_v44  ;;  %v103_v63 = vrot.slane %v102_v54, 1  ;;  %v92_v2 = vadd.f32 %v91_v58, %v90_v49  ;;  %p353_p0 = pnand %p352_p13, %p346_p10 }
  0x2b   :  { %277 = vmatprep.subr.mxu0 %v375_v0  ;;  %v114_v3 = vsel %vm113_vm1, %v68_v57, %v62_v56  ;;  %v98_v4 = vadd.f32 %v97_v59, %v96_v50  ;;  %vm125_vm7 = vcmask 1047559  }
  0x2c   :  { %278 = vmatpush3.msra.mxu0 %v143_v37  ;;  %v116_v5 = vsel %vm115_vm2, %v74_v60, %v114_v3  ;;  %v104_v8 = vadd.f32 %v103_v63, %v102_v54 }
  0x2d   :  { %279 = vmatprep.subr.mxu0 %v375_v0  ;;  %v118_v7 = vsel %vm117_vm3, %v80_v61, %v116_v5 }
  0x2e   :  { %280 = vmatpush3.msra.mxu0 %v142_v46  ;;  %v120_v9 = vsel %vm119_vm4, %v86_v62, %v118_v7 }
  0x2f   :  { %281 = vmatprep.subr.mxu0 %v375_v0  ;;  %v122_v11 = vsel %vm121_vm5, %v92_v2, %v120_v9 }
  0x30   :  { %282 = vmatpush3.msra.mxu0 %v141_v55  ;;  %v124_v12 = vsel %vm123_vm6, %v98_v4, %v122_v11 }
  0x31   :  { %283 = vmatprep.subr.mxu0 %v375_v0  ;;  %v126_v14 = vsel %vm125_vm7, %v104_v8, %v124_v12 }
  0x32   :  { %284 = vmatpush3.msra.mxu0 %v140_v1  ;;  %v134_v17 = vmul.f32 0.125, %v126_v14 }
  0x33   :  { %285 = vmatprep.subr.mxu0 %v375_v0 }
  0x34   :  { %286 = vmatpush3.msra.mxu0 %v139_v6 }
  0x35   :  { %287 = vmatprep.subr.mxu0 %v375_v0 }
  0x36   :  { %288 = vmatpush3.msra.mxu0 %v138_v10 }
  0x37   :  { %289 = vmatprep.subr.mxu0 %v375_v0 }
  0x38   :  { %290 = vmatpush3.msra.mxu0 %v137_v13 }
  0x39   :  { %291 = vmatprep.subr.mxu0 %v375_v0 }
  0x3a   :  { %292 = vmatpush3.msra.mxu0 %v136_v15 }
  0x3b   :  { %293 = vmatprep.subr.mxu0 %v375_v0 }
  0x3c   :  { %294 = vmatpush3.msra.mxu0 %v135_v16 }
  0x3d   :  { %296 = vmatmul.mubr.f32.vlgmr.msra.gmra.mxu0 %v134_v17 }
  0xfd   :  { %v224_v19 = vpop.f32.mrf.mxu0 }
  0xfe   :  { %v225_v20 = vadd.f32 %v245_v18, %v224_v19 }
  0xff   :  { %v297_v21 = vpop.f32.mrf.mxu0 }
 0x100   :  { %228 = vst [vmem:[#allocation8] sm:$0xff] %v225_v20 }
 0x101   :  { %356 = shalt.err (!%p353_p0)
}
 0x102   :  { %238 = dma.vmem_to_hbm [thread:$0]  %s236_s25, 128, %s433_s3, [#allocation5]  }
 0x103   :  { %369 = dma.done.wait [#allocation5], 128  }
 0x104   :  { %370 = vsyncadd [#allocation5], 4294967168 }
 0x105   :  { %242 = vsyncpa [#allocation4], 1 }
 0x106   :  { %243 = vsyncpa [#allocation7], 1 }
 0x107   :  { %244 = vsyncpa [#allocation5], 1 }

</bundles_post_ra>
